<compile_context>
chip_gen: v7x
topology: tpu7x:2x2x1
jax: 0.10.0
libtpu: 0.0.40
codegen_flags: <defaults>
</compile_context>

<pallas_src>
import jax
import jax.numpy as jnp
from jax.experimental import pallas as pl
from jax.experimental.pallas import tpu as pltpu

GEM_P = 3.0
GEM_EPS = 1e-6


def _self_attn_kernel(x_ref, wqt_ref, bq_ref, wk_ref, bk_ref, o_ref):
    # x_ref: (Bt, C, N); wqt: (C, Cq); bq: (1, Cq); wk: (Cq, C); bk: (Cq, 1)
    # o_ref: (Bt, 1, C)
    x = x_ref[...].astype(jnp.float32)                          # (Bt, C, N)
    n = x.shape[-1]

    # ---- GeM pooling: clamp + cube via two VPU multiplies (no EUP pow on the slab) ----
    xc = jnp.maximum(x, GEM_EPS)
    xc3 = xc * xc * xc
    gem_sum = jnp.sum(xc3, axis=2)                              # (Bt, C)  lane reduce
    gem = (gem_sum * (1.0 / n)) ** (1.0 / GEM_P)                # pow only on Bt*C elems

    # ---- 1x1 convs on the pooled vector, then fold q into the key weights ----
    wqt = wqt_ref[...].astype(jnp.float32)                      # (C, Cq)
    bq = bq_ref[...].astype(jnp.float32)                        # (1, Cq)
    wk = wk_ref[...].astype(jnp.float32)                        # (Cq, C)
    bk = bk_ref[...].astype(jnp.float32)                        # (Cq, 1)

    q = jnp.dot(gem, wqt, preferred_element_type=jnp.float32) + bq        # (Bt, Cq)
    v = jnp.dot(q, wk, preferred_element_type=jnp.float32)                # (Bt, C)
    c = jnp.dot(q, bk, preferred_element_type=jnp.float32)                # (Bt, 1)

    # ---- energy_n = v . x_n + c : batched (1,C)@(C,N) MXU matvec over the slab ----
    energy = jnp.einsum("bkc,bcn->bkn", v[:, None, :], x,
                        preferred_element_type=jnp.float32)               # (Bt, 1, N)
    energy = energy + c[:, :, None]

    # ---- softmax over N with deferred normalization ----
    m = jnp.max(energy, axis=2, keepdims=True)                  # (Bt, 1, 1)
    e = jnp.exp(energy - m)                                     # (Bt, 1, N)
    s = jnp.sum(e, axis=2, keepdims=True)                       # (Bt, 1, 1)

    # ---- out = x @ attn^T : MXU contraction over N, normalize the tiny result ----
    out = jnp.einsum("bkn,bcn->bkc", e, x,
                     preferred_element_type=jnp.float32)                  # (Bt, 1, C)
    out = out * pl.reciprocal(s, approx=True)
    o_ref[...] = out.astype(o_ref.dtype)


def self_attn_pallas(x, wq, bq, wk, bk, *, block_bytes_target=4 * 1024 * 1024):
    """x: (B, C, W, H) float32; wq/wk: (C//16, C); bq/bk: (C//16,).
    Returns (B, C, 1, 1) like the PyTorch module."""
    B, C, W, H = x.shape
    N = W * H
    Cq = wq.shape[0]

    x_flat = x.reshape(B, C, N)
    wqt = jnp.transpose(wq)           # (C, Cq)  — pre-transposed so kernel avoids XLU transpose
    bq_row = bq.reshape(1, Cq)
    bk_col = bk.reshape(Cq, 1)

    # Block several batches per grid step so the per-step block is ~block_bytes_target,
    # amortizing fixed per-step overhead when the per-batch slab is small.
    per_batch_bytes = C * N * x_flat.dtype.itemsize
    bt = max(1, min(B, block_bytes_target // max(per_batch_bytes, 1)))
    while B % bt != 0:
        bt -= 1
    block_bytes = bt * per_batch_bytes

    # VMEM budget: double-buffered input block + in-kernel temporaries (xc3, e, ...).
    vmem_limit = int(min(max(8 * block_bytes + (2 << 20), 32 << 20), 64 << 20))

    out = pl.pallas_call(
        _self_attn_kernel,
        out_shape=jax.ShapeDtypeStruct((B, 1, C), jnp.float32),
        grid=(B // bt,),
        in_specs=[
            pl.BlockSpec((bt, C, N), lambda g: (g, 0, 0)),   # x slab (Bt batches per step)
            pl.BlockSpec((C, Cq), lambda g: (0, 0)),         # query conv weight (transposed)
            pl.BlockSpec((1, Cq), lambda g: (0, 0)),         # query conv bias
            pl.BlockSpec((Cq, C), lambda g: (0, 0)),         # key conv weight
            pl.BlockSpec((Cq, 1), lambda g: (0, 0)),         # key conv bias
        ],
        out_specs=pl.BlockSpec((bt, 1, C), lambda g: (g, 0, 0)),  # lane-dense (C in lanes)
        compiler_params=pltpu.CompilerParams(
            dimension_semantics=("parallel",),
            vmem_limit_bytes=vmem_limit,
        ),
    )(x_flat, wqt, bq_row, wk, bk_col)

    return out.reshape(B, C, 1, 1)


def self_attn_reference(x, wq, bq, wk, bk):
    """Pure-JAX reference mirroring the PyTorch forward."""
    B, C, W, H = x.shape
    N = W * H
    xc = jnp.maximum(x, GEM_EPS)                                     # clamp(min=eps)
    gem = jnp.mean(xc ** GEM_P, axis=(2, 3)) ** (1.0 / GEM_P)        # (B, C)
    q = jnp.einsum("qc,bc->bq", wq, gem) + bq[None, :]               # (B, Cq)
    x_flat = x.reshape(B, C, N)
    k = jnp.einsum("qc,bcn->bqn", wk, x_flat) + bk[None, :, None]    # (B, Cq, N)
    energy = jnp.einsum("bq,bqn->bn", q, k)                          # (B, N)
    attn = jax.nn.softmax(energy, axis=-1)                           # (B, N)
    out = jnp.einsum("bcn,bn->bc", x_flat, attn)                     # (B, C)
    return out.reshape(B, C, 1, 1)


if __name__ == "__main__":
    # Small shapes consistent with the module: in_dim must be >= 16 (in_dim // 16 channels).
    B, C, W, H = 2, 32, 16, 16
    Cq = C // 16

    key = jax.random.PRNGKey(0)
    kx, kwq, kbq, kwk, kbk = jax.random.split(key, 5)

    x = jax.random.normal(kx, (B, C, W, H), dtype=jnp.float32)
    # Deterministic synthetic parameters (1x1 conv weights collapsed to (C_out, C_in)).
    bound = 1.0 / (C ** 0.5)
    wq = jax.random.uniform(kwq, (Cq, C), jnp.float32, -bound, bound)
    bq = jax.random.uniform(kbq, (Cq,), jnp.float32, -bound, bound)
    wk = jax.random.uniform(kwk, (Cq, C), jnp.float32, -bound, bound)
    bk = jax.random.uniform(kbk, (Cq,), jnp.float32, -bound, bound)

    out = self_attn_pallas(x, wq, bq, wk, bk)
    out = jax.block_until_ready(out)

    ref = jax.block_until_ready(self_attn_reference(x, wq, bq, wk, bk))
    assert out.shape == (B, C, 1, 1)
    assert jnp.allclose(out, ref, rtol=1e-2, atol=1e-2), "mismatch vs reference"

    print("KERNEL_OK")
</pallas_src>

<mosaic_0001>
module attributes {stable_mosaic.version = 11 : i64} {
  func.func @_self_attn_kernel(%arg0: i32, %arg1: memref<2x32x256xf32, #tpu.memory_space<vmem>>, %arg2: memref<32x2xf32, #tpu.memory_space<vmem>>, %arg3: memref<1x2xf32, #tpu.memory_space<vmem>>, %arg4: memref<2x32xf32, #tpu.memory_space<vmem>>, %arg5: memref<2x1xf32, #tpu.memory_space<vmem>>, %arg6: memref<2x1x32xf32, #tpu.memory_space<vmem>>) attributes {dimension_semantics = [#tpu.dimension_semantics<parallel>], iteration_bounds = array<i64: 1>, scalar_prefetch = 0 : i64, scratch_operands = 0 : i64, tpu.core_type = #tpu.core_type<tc>, window_params = [{transform_indices = @transform_0, window_bounds = array<i64: 2, 32, 256>}, {pipeline_mode = #tpu.pipeline_mode<synchronous>, transform_indices = @transform_1, window_bounds = array<i64: 32, 2>}, {pipeline_mode = #tpu.pipeline_mode<synchronous>, transform_indices = @transform_2, window_bounds = array<i64: 1, 2>}, {pipeline_mode = #tpu.pipeline_mode<synchronous>, transform_indices = @transform_3, window_bounds = array<i64: 2, 32>}, {pipeline_mode = #tpu.pipeline_mode<synchronous>, transform_indices = @transform_4, window_bounds = array<i64: 2, 1>}, {transform_indices = @transform_5, window_bounds = array<i64: 2, 1, 32>}]} {
    %c0 = arith.constant 0 : index
    %c0_0 = arith.constant 0 : index
    %c0_1 = arith.constant 0 : index
    %0 = vector.load %arg1[%c0, %c0_0, %c0_1] : memref<2x32x256xf32, #tpu.memory_space<vmem>>, vector<2x32x256xf32>
    %cst = arith.constant 9.99999997E-7 : f32
    %1 = vector.broadcast %cst : f32 to vector<2x32x256xf32>
    %2 = arith.maximumf %0, %1 : vector<2x32x256xf32>
    %3 = arith.mulf %2, %2 : vector<2x32x256xf32>
    %4 = arith.mulf %3, %2 : vector<2x32x256xf32>
    %cst_2 = arith.constant dense<0.000000e+00> : vector<2x32xf32>
    %5 = vector.multi_reduction <add>, %4, %cst_2 [2] : vector<2x32x256xf32> to vector<2x32xf32>
    %cst_3 = arith.constant 3.906250e-03 : f32
    %6 = vector.broadcast %cst_3 : f32 to vector<2x32xf32>
    %7 = arith.mulf %5, %6 : vector<2x32xf32>
    %cst_4 = arith.constant 0.333333343 : f32
    %8 = vector.broadcast %cst_4 : f32 to vector<2x32xf32>
    %9 = math.powf %7, %8 : vector<2x32xf32>
    %c0_5 = arith.constant 0 : index
    %c0_6 = arith.constant 0 : index
    %10 = vector.load %arg2[%c0_5, %c0_6] : memref<32x2xf32, #tpu.memory_space<vmem>>, vector<32x2xf32>
    %c0_7 = arith.constant 0 : index
    %c0_8 = arith.constant 0 : index
    %11 = vector.load %arg3[%c0_7, %c0_8] : memref<1x2xf32, #tpu.memory_space<vmem>>, vector<1x2xf32>
    %c0_9 = arith.constant 0 : index
    %c0_10 = arith.constant 0 : index
    %12 = vector.load %arg4[%c0_9, %c0_10] : memref<2x32xf32, #tpu.memory_space<vmem>>, vector<2x32xf32>
    %c0_11 = arith.constant 0 : index
    %c0_12 = arith.constant 0 : index
    %13 = vector.load %arg5[%c0_11, %c0_12] : memref<2x1xf32, #tpu.memory_space<vmem>>, vector<2x1xf32>
    %cst_13 = arith.constant dense<0.000000e+00> : vector<2x2xf32>
    %14 = tpu.matmul %9, %10, %cst_13 {dimension_numbers = #tpu.dot_dimension_numbers<[1], [0], [0], [1], [0, 0, 1, 1], [], []>} : vector<2x32xf32>, vector<32x2xf32>, vector<2x2xf32> -> vector<2x2xf32>
    %15 = vector.broadcast %11 : vector<1x2xf32> to vector<2x2xf32>
    %16 = arith.addf %14, %15 : vector<2x2xf32>
    %cst_14 = arith.constant dense<0.000000e+00> : vector<2x32xf32>
    %17 = tpu.matmul %16, %12, %cst_14 {dimension_numbers = #tpu.dot_dimension_numbers<[1], [0], [0], [1], [0, 0, 1, 1], [], []>} : vector<2x2xf32>, vector<2x32xf32>, vector<2x32xf32> -> vector<2x32xf32>
    %cst_15 = arith.constant dense<0.000000e+00> : vector<2x1xf32>
    %18 = tpu.matmul %16, %13, %cst_15 {dimension_numbers = #tpu.dot_dimension_numbers<[1], [0], [0], [1], [0, 0, 1, 1], [], []>} : vector<2x2xf32>, vector<2x1xf32>, vector<2x1xf32> -> vector<2x1xf32>
    %19 = vector.shape_cast %17 : vector<2x32xf32> to vector<2x1x32xf32>
    "tpu.trace_start"() <{level = 10 : i32, message = "bkc,bcn->bkn"}> : () -> ()
    %cst_16 = arith.constant dense<0.000000e+00> : vector<2x1x256xf32>
    %20 = tpu.matmul %19, %0, %cst_16 {dimension_numbers = #tpu.dot_dimension_numbers<[2], [1], [1], [2], [0, 0, 0, 1, 1, 2], [0], [0]>} : vector<2x1x32xf32>, vector<2x32x256xf32>, vector<2x1x256xf32> -> vector<2x1x256xf32>
    "tpu.trace_stop"() : () -> ()
    %21 = vector.shape_cast %18 : vector<2x1xf32> to vector<2x1x1xf32>
    %22 = vector.broadcast %21 : vector<2x1x1xf32> to vector<2x1x256xf32>
    %23 = arith.addf %20, %22 : vector<2x1x256xf32>
    %cst_17 = arith.constant dense<0xFF800000> : vector<2x1xf32>
    %24 = vector.multi_reduction <maximumf>, %23, %cst_17 [2] : vector<2x1x256xf32> to vector<2x1xf32>
    %25 = vector.shape_cast %24 : vector<2x1xf32> to vector<2x1x1xf32>
    %26 = vector.broadcast %25 : vector<2x1x1xf32> to vector<2x1x256xf32>
    %27 = arith.subf %23, %26 : vector<2x1x256xf32>
    %28 = math.exp %27 : vector<2x1x256xf32>
    %cst_18 = arith.constant dense<0.000000e+00> : vector<2x1xf32>
    %29 = vector.multi_reduction <add>, %28, %cst_18 [2] : vector<2x1x256xf32> to vector<2x1xf32>
    %30 = vector.shape_cast %29 : vector<2x1xf32> to vector<2x1x1xf32>
    "tpu.trace_start"() <{level = 10 : i32, message = "bkn,bcn->bkc"}> : () -> ()
    %cst_19 = arith.constant dense<0.000000e+00> : vector<2x1x32xf32>
    %31 = tpu.matmul %28, %0, %cst_19 {dimension_numbers = #tpu.dot_dimension_numbers<[2], [2], [1], [1], [0, 0, 0, 1, 1, 1], [0], [0]>} : vector<2x1x256xf32>, vector<2x32x256xf32>, vector<2x1x32xf32> -> vector<2x1x32xf32>
    "tpu.trace_stop"() : () -> ()
    %32 = tpu.reciprocal %30 {approx = true} : vector<2x1x1xf32> -> vector<2x1x1xf32>
    %33 = vector.broadcast %32 : vector<2x1x1xf32> to vector<2x1x32xf32>
    %34 = arith.mulf %31, %33 : vector<2x1x32xf32>
    %c0_20 = arith.constant 0 : index
    %c0_21 = arith.constant 0 : index
    %c0_22 = arith.constant 0 : index
    %35 = vector.load %arg6[%c0_20, %c0_21, %c0_22] : memref<2x1x32xf32, #tpu.memory_space<vmem>>, vector<2x1x32xf32>
    tpu.vector_store %arg6[%c0_20, %c0_21, %c0_22], %34 {strides = array<i32>} : memref<2x1x32xf32, #tpu.memory_space<vmem>>, vector<2x1x32xf32>,
    return
  }
  func.func @transform_0(%arg0: i32) -> (i32, i32, i32) {
    %c0_i32 = arith.constant 0 : i32
    %c0_i32_0 = arith.constant 0 : i32
    %c0_i32_1 = arith.constant 0 : i32
    return %arg0, %c0_i32, %c0_i32_0 : i32, i32, i32
  }
  func.func @transform_1(%arg0: i32) -> (i32, i32) {
    %c0_i32 = arith.constant 0 : i32
    %c0_i32_0 = arith.constant 0 : i32
    %c0_i32_1 = arith.constant 0 : i32
    return %c0_i32, %c0_i32_0 : i32, i32
  }
  func.func @transform_2(%arg0: i32) -> (i32, i32) {
    %c0_i32 = arith.constant 0 : i32
    %c0_i32_0 = arith.constant 0 : i32
    %c0_i32_1 = arith.constant 0 : i32
    return %c0_i32, %c0_i32_0 : i32, i32
  }
  func.func @transform_3(%arg0: i32) -> (i32, i32) {
    %c0_i32 = arith.constant 0 : i32
    %c0_i32_0 = arith.constant 0 : i32
    %c0_i32_1 = arith.constant 0 : i32
    return %c0_i32, %c0_i32_0 : i32, i32
  }
  func.func @transform_4(%arg0: i32) -> (i32, i32) {
    %c0_i32 = arith.constant 0 : i32
    %c0_i32_0 = arith.constant 0 : i32
    %c0_i32_1 = arith.constant 0 : i32
    return %c0_i32, %c0_i32_0 : i32, i32
  }
  func.func @transform_5(%arg0: i32) -> (i32, i32, i32) {
    %c0_i32 = arith.constant 0 : i32
    %c0_i32_0 = arith.constant 0 : i32
    %c0_i32_1 = arith.constant 0 : i32
    return %arg0, %c0_i32, %c0_i32_0 : i32, i32, i32
  }
}

</mosaic_0001>

<bundles_post_ra>
// kernel: tpu_custom_call.1
= control target key start
LH: loop header
LB: loop body
LE: loop exit
PB: predicated region body
PF: predicated region fallthrough
CT: control target
= control target key end

     0   :  { %10 = vsyncpa [#allocation3], 0  ;;  %s1532_s0 = inlined_call_operand.hbm [shape: f32[2,32,256], index: 0, kind: input, shape index: {}]   ;;  %s1533_s1 = inlined_call_operand.vmem [shape: f32[32,2], index: 1, kind: input, shape index: {}]   ;;  %s1534_s2 = inlined_call_operand.vmem [shape: f32[1,2], index: 2, kind: input, shape index: {}]   ;;  %s1535_s3 = inlined_call_operand.vmem [shape: f32[2,32], index: 3, kind: input, shape index: {}]   ;;  %s1536_s4 = inlined_call_operand.vmem [shape: f32[2,1], index: 4, kind: input, shape index: {}]   ;;  %s1537_s5 = inlined_call_operand.hbm [shape: f32[2,1,32], index: 5, kind: output, shape index: {}]  }
   0x1   :  { %11 = vsyncpa [#allocation4], 0  ;;  %s1161_s18 = smov [#allocation2]   ;;  %s1113_s22 = scalar_lea.hbm %s1532_s0, 2048 }
   0x2   :  { %s17_s19 = sshll.u32 %s1161_s18, 4  ;;  %p1114_p0 = scmp.ne.s32.totalorder %s1532_s0, %s1113_s22  ;;  %s18_s19 = int_to_ptr.vmem [resolvable:$true] %s17_s19 }
   0x3   :  { %p1117_p1 = scmp.lt.u32.totalorder %s1113_s22, %s1532_s0 }
   0x5   :  { %p1119_p2 = pnand %p1117_p1, %p1114_p0 }
   0x7   :  { %1122 = shalt.err (!%p1119_p2)
}
   0x8   :  { %s1123_s27 = scalar_lea.vmem %s18_s19, 2048  ;;  %p1128_p4 = scmp.lt.s32.totalorder %s18_s19, %s18_s19 }
   0x9   :  { %p1124_p3 = scmp.ne.s32.totalorder %s18_s19, %s1123_s27  ;;  %p1129_p5 = scmp.lt.s32.totalorder %s1123_s27, %s1123_s27 }
   0xb   :  { %p1130_p6 = por %p1129_p5, %p1128_p4 }
   0xd   :  { %p1131_p7 = pnand %p1130_p6, %p1124_p3 }
   0xf   :  { %1134 = shalt.err (!%p1131_p7)
}
  0x10   :  { %s1162_s28 = smov 256   ;;  %s1163_s29 = smov 16  }
  0x11   :  { %23 = dma.hbm_to_vmem [thread:$0]  %s1532_s0, 2048, %s18_s19, [#allocation3], %s1162_s28, %s1162_s28, %s1163_s29  }
  0x12   :  { %1157 = dma.done.wait [#allocation3], 2048  }
  0x13   :  { %1158 = vsyncadd [#allocation3], 4294965248  ;;  %v43_v0 = vld [vmem:[#allocation2 + $0x40] sm:$0xff]  ;;  %v1214_v1 = vld [vmem:[#allocation2 + $0x48] sm:$0xff]  ;;  %vm1538_vm0 = vmmov 0  }
  0x14   :  { %v45_v2 = vld [vmem:[#allocation2 + $0x50] sm:$0xff]  ;;  %v59_v3 = vmax.f32 %v43_v0, 1e-06  ;;  %v60_v4 = vmax.f32 %v1214_v1, 1e-06  ;;  %v35_v6 = vld [vmem:[#allocation2] sm:$0xff] }
  0x15   :  { %v1217_v5 = vpack.c.bf16 %v45_v2, %v43_v0  ;;  %v1219_v7 = vld [vmem:[#allocation2 + $0x8] sm:$0xff]  ;;  %v37_v8 = vld [vmem:[#allocation2 + $0x10] sm:$0xff]  ;;  %v51_v9 = vmax.f32 %v35_v6, 1e-06  ;;  %v1222_v11 = vld [vmem:[#allocation2 + $0x58] sm:$0xff] }
  0x16   :  { %v52_v10 = vmax.f32 %v1219_v7, 1e-06  ;;  %v75_v12 = vmul.f32 %v59_v3, %v59_v3  ;;  %v76_v13 = vmul.f32 %v60_v4, %v60_v4  ;;  %v1224_v14 = vpack.c.bf16 %v37_v8, %v35_v6  ;;  %v1226_v16 = vld [vmem:[#allocation2 + $0x18] sm:$0xff]  ;;  %v1229_v21 = vld [vmem:[#allocation2 + $0x60] sm:$0xff]  ;;  %v1232_v26 = vld [vmem:[#allocation2 + $0x68] sm:$0xff] }
  0x17   :  { %v61_v15 = vmax.f32 %v45_v2, 1e-06  ;;  %v67_v17 = vmul.f32 %v51_v9, %v51_v9  ;;  %v62_v19 = vmax.f32 %v1222_v11, 1e-06  ;;  %v53_v20 = vmax.f32 %v37_v8, 1e-06 }
  0x18   :  { %v68_v18 = vmul.f32 %v52_v10, %v52_v10  ;;  %v91_v22 = vmul.f32 %v75_v12, %v59_v3  ;;  %v92_v23 = vmul.f32 %v76_v13, %v60_v4  ;;  %v54_v25 = vmax.f32 %v1226_v16, 1e-06  ;;  %v1234_v31 = vld [vmem:[#allocation2 + $0x20] sm:$0xff]  ;;  %v1236_v32 = vld [vmem:[#allocation2 + $0x28] sm:$0xff]  ;;  %v1239_v37 = vld [vmem:[#allocation2 + $0x70] sm:$0xff] }
  0x19   :  { %v77_v24 = vmul.f32 %v61_v15, %v61_v15  ;;  %v83_v27 = vmul.f32 %v67_v17, %v51_v9  ;;  %v78_v29 = vmul.f32 %v62_v19, %v62_v19  ;;  %v69_v30 = vmul.f32 %v53_v20, %v53_v20  ;;  %v1241_v38 = vld [vmem:[#allocation2 + $0x78] sm:$0xff]  ;;  %v1246_v47 = vld [vmem:[#allocation2 + $0x30] sm:$0xff]  ;;  %v140_v17 = vld [vmem:[%s1533_s1 + $0x8] sm:$0xff] }
  0x1a   :  { %v84_v28 = vmul.f32 %v68_v18, %v52_v10  ;;  %v111_v33 = vadd.f32 %v92_v23, %v91_v22  ;;  %v70_v35 = vmul.f32 %v54_v25, %v54_v25  ;;  %v63_v36 = vmax.f32 %v1229_v21, 1e-06  ;;  %v1250_v52 = vld [vmem:[#allocation2 + $0x38] sm:$0xff]  ;;  %v141_v18 = vld [vmem:[%s1533_s1 + $0x10] sm:$0xff] }
  0x1b   :  { %v93_v34 = vmul.f32 %v77_v24, %v61_v15  ;;  %v94_v40 = vmul.f32 %v78_v29, %v62_v19  ;;  %v85_v41 = vmul.f32 %v69_v30, %v53_v20  ;;  %v64_v42 = vmax.f32 %v1232_v26, 1e-06  ;;  %v139_v15 = vld [vmem:[%s1533_s1] sm:$0xff]  ;;  %v142_v22 = vld [vmem:[%s1533_s1 + $0x18] sm:$0xff] }
  0x1c   :  { %v99_v39 = vadd.f32 %v84_v28, %v83_v27  ;;  %112 = vadd.xlane.f32.xlu1 %v111_v33  ;;  %v86_v43 = vmul.f32 %v70_v35, %v54_v25  ;;  %v79_v44 = vmul.f32 %v63_v36, %v63_v36  ;;  %v55_v45 = vmax.f32 %v1234_v31, 1e-06 }
  0x1d   :  { %v56_v46 = vmax.f32 %v1236_v32, 1e-06  ;;  %v114_v48 = vadd.f32 %v94_v40, %v93_v34  ;;  %v80_v49 = vmul.f32 %v64_v42, %v64_v42  ;;  %v65_v50 = vmax.f32 %v1239_v37, 1e-06 }
  0x1e   :  { %100 = vadd.xlane.f32.xlu0 %v99_v39  ;;  %v66_v51 = vmax.f32 %v1241_v38, 1e-06  ;;  %v102_v53 = vadd.f32 %v86_v43, %v85_v41  ;;  %v95_v54 = vmul.f32 %v79_v44, %v63_v36  ;;  %v71_v55 = vmul.f32 %v55_v45, %v55_v45 }
  0x1f   :  { %v72_v56 = vmul.f32 %v56_v46, %v56_v46  ;;  %v96_v57 = vmul.f32 %v80_v49, %v64_v42  ;;  %v81_v58 = vmul.f32 %v65_v50, %v65_v50  ;;  %v57_v60 = vmax.f32 %v1246_v47, 1e-06 }
  0x20   :  { %v82_v59 = vmul.f32 %v66_v51, %v66_v51  ;;  %115 = vadd.xlane.f32.xlu1 %v114_v48  ;;  %v87_v61 = vmul.f32 %v71_v55, %v55_v45  ;;  %v58_v63 = vmax.f32 %v1250_v52, 1e-06  ;;  %v1164_v19 = vmov 0.0|0.0  }
  0x21   :  { %v88_v62 = vmul.f32 %v72_v56, %v56_v46  ;;  %v117_v0 = vadd.f32 %v96_v57, %v95_v54  ;;  %v97_v2 = vmul.f32 %v81_v58, %v65_v50  ;;  %v73_v4 = vmul.f32 %v57_v60, %v57_v60  ;;  %875 = vmatprep.subr.bf16.mxu0 %v1164_v19 }
  0x22   :  { %103 = vadd.xlane.f32.xlu0 %v102_v53  ;;  %v98_v3 = vmul.f32 %v82_v59, %v66_v51  ;;  %v74_v8 = vmul.f32 %v58_v63, %v58_v63  ;;  %v876_v20 = vpack.c.bf16 %v140_v17, %v139_v15  ;;  %v1166_v23 = vmov 0.0  }
  0x23   :  { %v105_v6 = vadd.f32 %v88_v62, %v87_v61  ;;  %v89_v9 = vmul.f32 %v73_v4, %v57_v60  ;;  %862 = vmatprep.mubr.msk.f32.mxu0 %vm1538_vm0, %v1166_v23  ;;  %865 = vmatprep.subr.mxu1 %v1166_v23  ;;  %v879_v24 = vpack.c.bf16 %v142_v22, %v141_v18  ;;  %v160_v59 = vlaneseq }
  0x24   :  { %118 = vadd.xlane.f32.xlu1 %v117_v0  ;;  %v120_v10 = vadd.f32 %v98_v3, %v97_v2  ;;  %v90_v12 = vmul.f32 %v74_v8, %v58_v63  ;;  %867 = vmatprep.mubr.msk.f32.mxu1 %vm1538_vm0, %v1166_v23 }
  0x25   :  { %877 = vmatpush3.bf16.msra.mxu0 %v876_v20  ;;  %v161_v2 = vand.u32 127, %v160_v59  ;;  %v1319_v3 = vshrl.u32 %v160_v59, 7 }
  0x26   :  { %106 = vadd.xlane.f32.xlu0 %v105_v6  ;;  %v108_v13 = vadd.f32 %v90_v12, %v89_v9  ;;  %878 = vmatprep.subr.bf16.mxu0 %v1164_v19 }
  0x27   :  { %v166_v4 = vadd.s32 4294967288, %v161_v2  ;;  %v173_v6 = vadd.s32 4294967280, %v161_v2  ;;  %v180_v8 = vadd.s32 4294967272, %v161_v2  ;;  %v1324_v19 = vsub.s32 %v161_v2, %v1319_v3 }
  0x28   :  { %121 = vadd.xlane.f32.xlu1 %v120_v10 }
  0x29   :  { %880 = vmatpush3.bf16.msra.mxu0 %v879_v24  ;;  %v1327_v20 = vsub.s32 %v166_v4, %v1319_v3  ;;  %v1330_v22 = vsub.s32 %v173_v6, %v1319_v3 }
  0x2a   :  { %109 = vadd.xlane.f32.xlu0 %v108_v13 }
  0xa9   :  { %v113_v25 = vpop.xlane.xlu1 %112 }
  0xaa   :  { %v1271_v27 = vmul.f32 0.00390625, %v113_v25 }
  0xab   :  { %v101_v28 = vpop.xlane.xlu0 %100 }
  0xac   :  { %v1273_v29 = vmul.f32 0.00390625, %v101_v28  ;;  %v1276_v30 = vand.u32 2147483647, %v1271_v27  ;;  %v991_v10 = vand.u32 2147483648, %v1271_v27  ;;  %vm986_vm1 = vcmp.lt.f32.partialorder %v1271_v27, 0.0 }
  0xad   :  { %v116_v34 = vpop.xlane.xlu1 %115  ;;  %v1334_v28 = vsub.s32 %v180_v8, %v1319_v3  ;;  %vm985_vm8 = vcmp.eq.f32.partialorder %v1271_v27, 0.0 }
  0xae   :  { %v1279_v33 = vand.u32 2147483647, %v1273_v29  ;;  %1069 = vlog2.f32 %v1276_v30  ;;  %v1283_v36 = vmul.f32 0.00390625, %v116_v34  ;;  %v919_v13 = vand.u32 2147483648, %v1273_v29 }
  0xaf   :  { %v104_v35 = vpop.xlane.xlu0 %103  ;;  %vm995_vm2 = vweird.f32 %v1276_v30  ;;  %vm997_vm3 = vcmp.eq.f32.partialorder %v1276_v30, 0.0  ;;  %vm914_vm4 = vcmp.lt.f32.partialorder %v1273_v29, 0.0 }
  0xb0   :  { %1071 = vlog2.f32 %v1279_v33  ;;  %v1285_v39 = vmul.f32 0.00390625, %v104_v35  ;;  %v1288_v41 = vand.u32 2147483647, %v1283_v36  ;;  %vm923_vm5 = vweird.f32 %v1279_v33 }
  0xb1   :  { %v119_v40 = vpop.xlane.xlu1 %118  ;;  %vm925_vm6 = vcmp.eq.f32.partialorder %v1279_v33, 0.0  ;;  %vm1004_vm7 = vcmp.lt.f32.partialorder %v1283_v36, 0.0  ;;  %vm1003_vm9 = vcmp.eq.f32.partialorder %v1283_v36, 0.0  ;;  %vm916_vm11 = vcmp.eq.f32.partialorder %v1279_v33, inf }
  0xb2   :  { %v1291_v43 = vand.u32 2147483647, %v1285_v39  ;;  %1073 = vlog2.f32 %v1288_v41  ;;  %v1295_v45 = vmul.f32 0.00390625, %v119_v40  ;;  %v1009_v40 = vand.u32 2147483648, %v1283_v36 }
  0xb3   :  { %v107_v42 = vpop.xlane.xlu0 %106  ;;  %vm932_vm10 = vcmp.lt.f32.partialorder %v1285_v39, 0.0  ;;  %vm1013_vm12 = vweird.f32 %v1288_v41  ;;  %vm1015_vm14 = vcmp.eq.f32.partialorder %v1288_v41, 0.0 }
  0xb4   :  { %1075 = vlog2.f32 %v1291_v43  ;;  %v1297_v46 = vmul.f32 0.00390625, %v107_v42  ;;  %v1300_v50 = vand.u32 2147483647, %v1295_v45  ;;  %vm941_vm15 = vweird.f32 %v1291_v43 }
  0xb5   :  { %v122_v44 = vpop.xlane.xlu1 %121  ;;  %vm934_vm0 = vcmp.eq.f32.partialorder %v1291_v43, inf }
  0xb6   :  { %v1302_v51 = vmul.f32 0.00390625, %v122_v44  ;;  %v1305_v55 = vand.u32 2147483647, %v1297_v46  ;;  %1077 = vlog2.f32 %v1300_v50  ;;  %vm1033_vm13 = vcmp.eq.f32.partialorder %v1300_v50, 0.0 }
  0xb7   :  { %v110_v48 = vpop.xlane.xlu0 %109 }
  0xb8   :  { %v1070_v49 = vpop.eup %1069  ;;  %v1308_v57 = vmul.f32 0.00390625, %v110_v48  ;;  %v1311_v58 = vand.u32 2147483647, %v1302_v51 }
  0xb9   :  { %v992_v54 = vmul.f32 0.33333334, %v1070_v49  ;;  %v937_v49 = vand.u32 2147483648, %v1285_v39 }
  0xba   :  { %v1072_v53 = vpop.eup %1071  ;;  %v1316_v61 = vand.u32 2147483647, %v1308_v57 }
  0xbb   :  { %v920_v56 = vmul.f32 0.33333334, %v1072_v53  ;;  %1079 = vpow2.f32 %v992_v54 }
  0xbc   :  { %v1074_v60 = vpop.eup %1073 }
  0xbd   :  { %1081 = vpow2.f32 %v920_v56  ;;  %v1010_v63 = vmul.f32 0.33333334, %v1074_v60 }
  0xbe   :  { %1083 = vlog2.f32 %v1305_v55  ;;  %v1076_v62 = vpop.eup %1075 }
  0xbf   :  { %1085 = vlog2.f32 %v1311_v58  ;;  %v938_v0 = vmul.f32 0.33333334, %v1076_v62 }
  0xc0   :  { %1087 = vlog2.f32 %v1316_v61  ;;  %v1078_v9 = vpop.eup %1077 }
  0xc1   :  { %1089 = vpow2.f32 %v1010_v63  ;;  %v1028_v15 = vmul.f32 0.33333334, %v1078_v9  ;;  %v955_v9 = vand.u32 2147483648, %v1297_v46 }
  0xc2   :  { %1091 = vpow2.f32 %v938_v0  ;;  %v1027_v0 = vand.u32 2147483648, %v1295_v45 }
  0xc3   :  { %1093 = vpow2.f32 %v1028_v15 }
  0xc5   :  { %v1080_v12 = vpop.eup %1079 }
  0xc6   :  { %v994_v18 = vor.u32 %v1080_v12, %v991_v10 }
  0xc7   :  { %v1082_v17 = vpop.eup %1081 }
  0xc8   :  { %v1084_v24 = vpop.eup %1083  ;;  %v922_v25 = vor.u32 %v1082_v17, %v919_v13  ;;  %v996_v48 = vsel %vm995_vm2, %v1271_v27, %v994_v18  ;;  %vm943_vm2 = vcmp.eq.f32.partialorder %v1291_v43, 0.0 }
  0xc9   :  { %v1086_v34 = vpop.eup %1085  ;;  %v956_v35 = vmul.f32 0.33333334, %v1084_v24  ;;  %v999_v62 = vsel %vm997_vm3, %v991_v10, %v996_v48  ;;  %vm1021_vm3 = vcmp.eq.f32.partialorder %v1295_v45, 0.0  ;;  %v1045_v24 = vand.u32 2147483648, %v1302_v51 }
  0xca   :  { %v1046_v42 = vmul.f32 0.33333334, %v1086_v34  ;;  %v1088_v44 = vpop.eup %1087  ;;  %v924_v54 = vsel %vm923_vm5, %v1273_v29, %v922_v25  ;;  %vm1031_vm5 = vweird.f32 %v1300_v50  ;;  %v1000_v10 = vsel %vm986_vm1, nan, %v999_v62 }
  0xcb   :  { %1095 = vpow2.f32 %v956_v35  ;;  %v1090_v53 = vpop.eup %1089  ;;  %v974_v56 = vmul.f32 0.33333334, %v1088_v44  ;;  %v927_v2 = vsel %vm925_vm6, %v919_v13, %v924_v54  ;;  %vm959_vm6 = vweird.f32 %v1305_v55 }
  0xcc   :  { %1097 = vpow2.f32 %v1046_v42  ;;  %v1092_v59 = vpop.eup %1091  ;;  %v1012_v60 = vor.u32 %v1090_v53, %v1009_v40  ;;  %v928_v17 = vsel %vm914_vm4, nan, %v927_v2  ;;  %v973_v34 = vand.u32 2147483648, %v1308_v57 }
  0xcd   :  { %v940_v63 = vor.u32 %v1092_v59, %v937_v49  ;;  %1099 = vpow2.f32 %v974_v56  ;;  %v1094_v15 = vpop.eup %1093  ;;  %v1001_v35 = vsel %vm985_vm8, 0.0, %v1000_v10  ;;  %vm968_vm4 = vcmp.lt.f32.partialorder %v1308_v57, 0.0 }
  0xce   :  { %v1014_v4 = vsel %vm1013_vm12, %v1283_v36, %v1012_v60  ;;  %v1030_v25 = vor.u32 %v1094_v15, %v1027_v0  ;;  %vm1540_vm12 = vcmp.eq.f32.partialorder %v1285_v39, 0.0  ;;  %vm967_vm8 = vcmp.eq.f32.partialorder %v1308_v57, 0.0 }
  0xcf   :  { %v1017_v6 = vsel %vm1015_vm14, %v1009_v40, %v1014_v4  ;;  %v942_v8 = vsel %vm941_vm15, %v1285_v39, %v940_v63  ;;  %vm1539_vm15 = vcmp.eq.f32.partialorder %v1273_v29, 0.0  ;;  %vm185_vm14 = vcmask 261312  }
  0xd0   :  { %v1018_v12 = vsel %vm1004_vm7, nan, %v1017_v6  ;;  %v945_v13 = vsel %vm943_vm2, %v937_v49, %v942_v8  ;;  %vm1049_vm2 = vweird.f32 %v1311_v58  ;;  %v929_v44 = vsel %vm1539_vm15, 0.0, %v928_v17 }
  0xd1   :  { %v946_v18 = vsel %vm932_vm10, nan, %v945_v13  ;;  %v1019_v40 = vsel %vm1003_vm9, 0.0, %v1018_v12  ;;  %vm1024_vm10 = vcmp.eq.f32.partialorder %v1300_v50, inf  ;;  %v1032_v27 = vsel %vm1031_vm5, %v1295_v45, %v1030_v25 }
  0xd2   :  { %v947_v48 = vsel %vm1540_vm12, 0.0, %v946_v18  ;;  %vm977_vm9 = vweird.f32 %v1316_v61  ;;  %v1035_v49 = vsel %vm1033_vm13, %v1027_v0, %v1032_v27  ;;  %vm979_vm7 = vcmp.eq.f32.partialorder %v1316_v61, 0.0 }
  0xd3   :  { %vm1051_vm15 = vcmp.eq.f32.partialorder %v1311_v58, 0.0  ;;  %vm1541_vm12 = vcmp.eq.f32.partialorder %v1276_v30, inf  ;;  %vm1542_vm1 = vcmp.eq.f32.partialorder %v1288_v41, inf  ;;  %vm1543_vm5 = vcmp.lt.f32.partialorder %v1295_v45, 0.0 }
  0xd4   :  { %v1002_v29 = vsel %vm1541_vm12, inf, %v1001_v35  ;;  %v1020_v39 = vsel %vm1542_vm1, inf, %v1019_v40  ;;  %v1036_v54 = vsel %vm1543_vm5, nan, %v1035_v49  ;;  %v930_v60 = vsel %vm916_vm11, inf, %v929_v44  ;;  %v837_v44 = vld [vmem:[%s1534_s2] ss:$0 sm:$0xff] }
  0xd5   :  { %v1096_v42 = vpop.eup %1095  ;;  %v948_v62 = vsel %vm934_vm0, inf, %v947_v48  ;;  %v1037_v63 = vsel %vm1021_vm3, 0.0, %v1036_v54  ;;  %vm1544_vm13 = vcmp.eq.f32.partialorder %v1305_v55, 0.0  ;;  %vm1545_vm0 = vcmp.lt.f32.partialorder %v1297_v46, 0.0  ;;  %v145_v49 = vld [vmem:[%s1536_s4] sm:$0x3] }
  0xd6   :  { %v1098_v36 = vpop.eup %1097  ;;  %v958_v53 = vor.u32 %v1096_v42, %v955_v9  ;;  %v1038_v33 = vsel %vm1024_vm10, inf, %v1037_v63  ;;  %v190_v4 = vrot.slane %v1002_v29, %v1324_v19  ;;  %v194_v6 = vrot.slane %v1020_v39, %v1327_v20  ;;  %v144_v42 = vld [vmem:[%s1535_s3] sm:$0x3]  ;;  %s1169_s2 = smov [#allocation5]  }
  0xd7   :  { %v1048_v56 = vor.u32 %v1098_v36, %v1045_v24  ;;  %v1100_v59 = vpop.eup %1099  ;;  %vm1546_vm11 = vcmp.eq.f32.partialorder %v1297_v46, 0.0  ;;  %vm1547_vm3 = vcmp.lt.f32.partialorder %v1302_v51, 0.0  ;;  %v199_v50 = vrot.slane %v1038_v33, %v1330_v22  ;;  %s825_s4 = sshll.u32 %s1169_s2, 4  ;;  %s826_s4 = int_to_ptr.vmem [resolvable:$true] %s825_s4 }
  0xd8   :  { %v960_v30 = vsel %vm959_vm6, %v1297_v46, %v958_v53  ;;  %v976_v2 = vor.u32 %v1100_v59, %v973_v34  ;;  %vm1548_vm6 = vcmp.eq.f32.partialorder %v1305_v55, inf  ;;  %vm1549_vm1 = vcmp.eq.f32.partialorder %v1302_v51, 0.0  ;;  %s1135_s18 = scalar_lea.vmem %s826_s4, 32  ;;  %p1140_p9 = scmp.lt.s32.totalorder %s826_s4, %s826_s4 }
  0xd9   :  { %v963_v41 = vsel %vm1544_vm13, %v955_v9, %v960_v30  ;;  %v1050_v0 = vsel %vm1049_vm2, %v1302_v51, %v1048_v56  ;;  %v170_v46 = vrot.slane %v948_v62, %v1327_v20  ;;  %vm970_vm2 = vcmp.eq.f32.partialorder %v1316_v61, inf  ;;  %p1136_p8 = scmp.ne.s32.totalorder %s826_s4, %s1135_s18  ;;  %p1141_p10 = scmp.lt.s32.totalorder %s1135_s18, %s1135_s18 }
  0xda   :  { %v964_v43 = vsel %vm1545_vm0, nan, %v963_v41  ;;  %v1053_v45 = vsel %vm1051_vm15, %v1045_v24, %v1050_v0  ;;  %v978_v9 = vsel %vm977_vm9, %v1308_v57, %v976_v2  ;;  %vm1550_vm10 = vcmp.eq.f32.partialorder %v1311_v58, inf }
  0xdb   :  { %v965_v8 = vsel %vm1546_vm11, 0.0, %v964_v43  ;;  %v1054_v10 = vsel %vm1547_vm3, nan, %v1053_v45  ;;  %v981_v13 = vsel %vm979_vm7, %v973_v34, %v978_v9  ;;  %v165_v25 = vrot.slane %v930_v60, %v1324_v19  ;;  %p1142_p11 = por %p1141_p10, %p1140_p9 }
  0xdc   :  { %v966_v12 = vsel %vm1548_vm6, inf, %v965_v8  ;;  %v1055_v15 = vsel %vm1549_vm1, 0.0, %v1054_v10  ;;  %v982_v17 = vsel %vm968_vm4, nan, %v981_v13  ;;  %vm1551_vm7 = vcmask 130112  }
  0xdd   :  { %v1056_v18 = vsel %vm1550_vm10, inf, %v1055_v15  ;;  %v177_v24 = vrot.slane %v966_v12, %v1330_v22  ;;  %v983_v55 = vsel %vm967_vm8, 0.0, %v982_v17  ;;  %v195_v51 = vsel %vm1551_vm7, %v194_v6, %v190_v4  ;;  %vm1553_vm15 = vmmov %vm1551_vm7  ;;  %p1143_p12 = pnand %p1142_p11, %p1136_p8 }
  0xde   :  { %v204_v34 = vrot.slane %v1056_v18, %v1334_v28  ;;  %v984_v20 = vsel %vm970_vm2, inf, %v983_v55  ;;  %vm1552_vm9 = vcmask 195712   ;;  %v172_v35 = vsel %vm1553_vm15, %v170_v46, %v165_v25 }
  0xdf   :  { %v200_v61 = vsel %vm1552_vm9, %v199_v50, %v195_v51  ;;  %v184_v40 = vrot.slane %v984_v20, %v1334_v28  ;;  %vm206_vm4 = vcmask 1041409   ;;  %vm1554_vm12 = vmmov %vm1552_vm9  ;;  %vm208_vm5 = vcmask 261120  }
  0xe0   :  { %v205_v58 = vsel %vm185_vm14, %v204_v34, %v200_v61  ;;  %v179_v22 = vsel %vm1554_vm12, %v177_v24, %v172_v35  ;;  %vm285_vm8 = vcmask 1041408   ;;  %v889_v28 = vpack.c.bf16 %v1222_v11, %v1214_v1 }
  0xe1   :  { %v186_v57 = vsel %vm185_vm14, %v184_v40, %v179_v22  ;;  %866 = vmatpush3.msk.msra.mxu1 %vm285_vm8, %v144_v42  ;;  %vm281_vm14 = vcmask 15360   ;;  %v881_v53 = vpack.c.bf16 %v1226_v16, %v1219_v7  ;;  %vm1555_vm13 = vmmov 0  }
  0xe2   :  { %v207_v19 = vsel %vm206_vm4, %v205_v58, %v186_v57  ;;  %870 = vmatprep.subr.mxu1 %v1166_v23  ;;  %890 = vmatprep.subr.bf16.mxu0 %v889_v28  ;;  %v885_v1 = vpack.c.bf16 %v1250_v52, %v1236_v32  ;;  %v887_v11 = vpack.c.bf16 %v1246_v47, %v1234_v31  ;;  %v1167_v29 = vmov 0  }
  0xe3   :  { %863 = vmatmul.mubr.msk.f32.vlgmr.msra.gmra.mrb[0].mxu0 %vm208_vm5, %v207_v19  ;;  %v893_v7 = vpack.c.bf16 %v1241_v38, %v1232_v26  ;;  %v895_v16 = vpack.c.bf16 %v1239_v37, %v1229_v21  ;;  %1067 = vset.pattern.permute.xlu0 %v1167_v29  ;;  %v484_v30 = vsub.s32 0, %v1319_v3  ;;  %vm640_vm0 = vcmask 1040384  }
  0xe4   :  { %633 = vmatprep.mubr.f32.mxu0 %v1166_v23  ;;  %892 = vmatpush1.bf16.msra.mxu0 %v1217_v5  ;;  %vm817_vm11 = vcmask 253952  }
  0xe5   :  { %894 = vmatprep.subr.bf16.mxu0 %v893_v7  ;;  %1068 = vset.pattern.permute.xlu1 %v1167_v29 }
  0xe8   :  { %896 = vmatpush1.bf16.msra.mxu0 %v895_v16 }
  0xe9   :  { %906 = vmatprep.subr.bf16.mxu0 %v889_v28 }
 0x1b6   :  { %v277_v48 = vpop.f32.mrb[0].mxu0 }
 0x1b7   :  { %v278_v27 = vadd.f32 %v837_v44, %v277_v48  ;;  %v864_v36 = vpop.f32.mrb[1].mxu0 }
 0x1b9   :  { %868 = vmatmul.mubr.msk.f32.vlgmr.msra.gmra.mrb[0].mxu1 %vm281_vm14, %v278_v27 }
 0x1ba   :  { %871 = vmatpush3.msk.msra.mxu1 %vm285_vm8, %v145_v49  ;;  %872 = vmatprep.mubr.msk.f32.mxu1 %vm1555_vm13, %v1166_v23 }
 0x1bb   :  { %882 = vmatprep.subr.bf16.mxu1 %v881_v53 }
 0x1bd   :  { %873 = vmatmul.mubr.msk.f32.vlgmr.msra.gmra.mrb[2].mxu1 %vm281_vm14, %v278_v27 }
 0x1be   :  { %884 = vmatpush1.bf16.msra.mxu1 %v1224_v14  ;;  %560 = vmatprep.mubr.f32.mxu1 %v1166_v23  ;;  %v1168_v23 = vmov 1966171168  }
 0x1bf   :  { %886 = vmatprep.subr.bf16.mxu1 %v885_v1  ;;  %v434_v32 = vunpack.c.l.s4 %v1168_v23 }
 0x1c1   :  { %v435_v52 = vunpack.c.0.s8 %v434_v32 }
 0x1c2   :  { %888 = vmatpush1.bf16.msra.mxu1 %v887_v11 }
 0x1c3   :  { %898 = vmatprep.subr.bf16.mxu1 %v881_v53  ;;  %v438_v31 = vsub.s32 %v435_v52, %v1319_v3 }
 0x28c   :  { %v355_v47 = vpop.f32.mrb[0].mxu1 }
 0x28d   :  { %v439_v39 = vrot.slane %v355_v47, %v438_v31  ;;  %v869_v54 = vpop.f32.mrb[1].mxu1 }
 0x28f   :  { %v440_v26 = vcombine.high %v439_v39, %v439_v39  ;;  %v447_v38 = vrot.slane %v439_v39, %v438_v31 }
 0x290   :  { %v428_v56 = vpop.f32.mrb[2].mxu1 }
 0x291   :  { %v454_v59 = vrot.slane %v440_v26, %v438_v31  ;;  %v462_v21 = vrot.slane %v428_v56, %v438_v31  ;;  %v874_v37 = vpop.f32.mrb[3].mxu1  ;;  %843 = vmatmul.mubr.msk.f32.vlgmr.msra.gmra.mrb[4].mxu1 %vm208_vm5, %v447_v38 }
 0x292   :  { %900 = vmatpush1.bf16.xpose.msra.mxu1 %v1224_v14 }
 0x293   :  { %v463_v60 = vcombine.high %v462_v21, %v462_v21  ;;  %v470_v62 = vrot.slane %v462_v21, %v438_v31  ;;  %844 = vmatmul.mubr.msk.f32.vlgmr.msra.gmra.mrb[2].mxu0 %vm208_vm5, %v454_v59  ;;  %902 = vmatprep.subr.bf16.mxu1 %v885_v1 }
 0x294   :  { %908 = vmatpush1.bf16.xpose.msra.mxu0 %v1217_v5 }
 0x295   :  { %479 = vperm.xlu0 %1067, %v470_v62   ;;  %v477_v63 = vrot.slane %v463_v60, %v438_v31  ;;  %910 = vmatprep.subr.bf16.mxu0 %v893_v7 }
 0x297   :  { %487 = vperm.xlu1 %1068, %v477_v63  }
 0x29a   :  { %904 = vmatpush1.bf16.xpose.msra.mxu1 %v887_v11 }
 0x29c   :  { %912 = vmatpush1.bf16.xpose.msra.mxu0 %v895_v16 }
 0x314   :  { %v480_v41 = vpop.permute.xlu0 %479 }
 0x315   :  { %v485_v2 = vrot.slane %v480_v41, %v484_v30 }
 0x316   :  { %v488_v0 = vpop.permute.xlu1 %487 }
 0x317   :  { %v493_v14 = vrot.slane %v488_v0, %v484_v30 }
 0x364   :  { %v562_v33 = vpop.f32.mrb[4].mxu1 }
 0x365   :  { %v563_v43 = vadd.f32 %v562_v33, %v485_v2  ;;  %v564_v45 = vpop.f32.mrb[5].mxu1 }
 0x366   :  { %v565_v4 = vadd.f32 %v564_v45, %v485_v2  ;;  %v635_v6 = vpop.f32.mrb[2].mxu0 }
 0x367   :  { %v636_v8 = vadd.f32 %v635_v6, %v493_v14  ;;  %v637_v5 = vpop.f32.mrb[3].mxu0  ;;  %v641_v9 = vsel %vm640_vm0, %v563_v43, -inf }
 0x368   :  { %v638_v10 = vadd.f32 %v637_v5, %v493_v14  ;;  %v642_v50 = vsel %vm640_vm0, %v565_v4, -inf }
 0x369   :  { %v643_v12 = vmax.f32 %v641_v9, %v642_v50  ;;  %v646_v3 = vsel %vm640_vm0, %v636_v8, -inf }
 0x36a   :  { %v647_v13 = vsel %vm640_vm0, %v638_v10, -inf }
 0x36b   :  { %644 = vmax.xlane.f32.xlu1 %v643_v12  ;;  %v648_v15 = vmax.f32 %v646_v3, %v647_v13 }
 0x36d   :  { %649 = vmax.xlane.f32.xlu0 %v648_v15 }
 0x3f8   :  { %v645_v46 = vpop.xlane.xlu1 %644 }
 0x3f9   :  { %v651_v17 = vsub.f32 %v563_v43, %v645_v46  ;;  %v652_v18 = vsub.f32 %v565_v4, %v645_v46 }
 0x3fa   :  { %v650_v24 = vpop.xlane.xlu0 %649 }
 0x3fb   :  { %v655_v55 = vmul.f32 1.442695, %v651_v17  ;;  %v657_v25 = vmul.f32 1.442695, %v652_v18  ;;  %v653_v51 = vsub.f32 %v636_v8, %v650_v24  ;;  %v654_v34 = vsub.f32 %v638_v10, %v650_v24 }
 0x3fd   :  { %1101 = vpow2.f32 %v655_v55  ;;  %v659_v20 = vmul.f32 1.442695, %v653_v51  ;;  %v661_v61 = vmul.f32 1.442695, %v654_v34 }
 0x3fe   :  { %1103 = vpow2.f32 %v657_v25 }
 0x3ff   :  { %1105 = vpow2.f32 %v659_v20 }
 0x400   :  { %1107 = vpow2.f32 %v661_v61 }
 0x407   :  { %v1102_v35 = vpop.eup %1101 }
 0x408   :  { %v1104_v40 = vpop.eup %1103  ;;  %v663_v58 = vsel %vm640_vm0, %v1102_v35, 0.0 }
 0x409   :  { %v1106_v22 = vpop.eup %1105  ;;  %737 = vmatprep.mubr.f32.mxu1 %v1104_v40  ;;  %v664_v57 = vsel %vm640_vm0, %v1104_v40, 0.0 }
 0x40a   :  { %v1108_v19 = vpop.eup %1107  ;;  %738 = vmatmul.mubr.f32.vlgmr.msra.gmra.mrb[6].mxu1 %v1102_v35  ;;  %v665_v42 = vadd.f32 %v664_v57, %v663_v58  ;;  %v668_v28 = vsel %vm640_vm0, %v1106_v22, 0.0 }
 0x40b   :  { %807 = vmatprep.mubr.f32.mxu0 %v1108_v19  ;;  %v669_v44 = vsel %vm640_vm0, %v1108_v19, 0.0 }
 0x40c   :  { %666 = vadd.xlane.f32.xlu1 %v665_v42  ;;  %808 = vmatmul.mubr.f32.vlgmr.msra.gmra.mrb[4].mxu0 %v1106_v22  ;;  %v670_v48 = vadd.f32 %v669_v44, %v668_v28 }
 0x410   :  { %671 = vadd.xlane.f32.xlu1 %v670_v48 }
 0x499   :  { %v667_v27 = vpop.xlane.xlu1 %666 }
 0x49a   :  { %1109 = vrcp.f32 %v667_v27 }
 0x49d   :  { %v672_v36 = vpop.xlane.xlu1 %671 }
 0x49e   :  { %1111 = vrcp.f32 %v672_v36 }
 0x4a4   :  { %v1110_v49 = vpop.eup %1109 }
 0x4a8   :  { %v1112_v7 = vpop.eup %1111 }
 0x4dd   :  { %v739_v53 = vpop.f32.mrb[6].mxu1 }
 0x4de   :  { %v815_v1 = vmul.f32 %v1110_v49, %v739_v53  ;;  %v741_v11 = vpop.f32.mrb[7].mxu1 }
 0x4df   :  { %v809_v16 = vpop.f32.mrb[4].mxu0 }
 0x4e0   :  { %818 = vst.msk [vmem:[#allocation5] sm:$0x1] %vm817_vm11, %v815_v1  ;;  %v816_v29 = vmul.f32 %v1112_v7, %v809_v16  ;;  %v811_v23 = vpop.f32.mrb[5].mxu0 }
 0x4e2   :  { %819 = vst.msk [vmem:[#allocation5 + $0x1] sm:$0x1] %vm817_vm11, %v816_v29 }
 0x4e3   :  { %1146 = shalt.err (!%p1143_p12)
}
 0x4e4   :  { %s1147_s21 = scalar_lea.hbm %s1537_s5, 32 }
 0x4e5   :  { %p1148_p13 = scmp.ne.s32.totalorder %s1537_s5, %s1147_s21  ;;  %p1151_p0 = scmp.lt.u32.totalorder %s1147_s21, %s1537_s5 }
 0x4e7   :  { %p1153_p1 = pnand %p1151_p0, %p1148_p13 }
 0x4e9   :  { %1156 = shalt.err (!%p1153_p1)
}
 0x4ea   :  { %s1170_s26 = smov 1  }
 0x4eb   :  { %831 = dma.vmem_to_hbm [thread:$0]  %s826_s4, 32, %s1537_s5, [#allocation4], %s1163_s29, %s1163_s29, %s1170_s26  }
 0x4ec   :  { %1159 = dma.done.wait [#allocation4], 32  }
 0x4ed   :  { %1160 = vsyncadd [#allocation4], 4294967264 }
 0x4ee   :  { %835 = vsyncpa [#allocation3], 1 }
 0x4ef   :  { %836 = vsyncpa [#allocation4], 1 }

</bundles_post_ra>
